<compile_context>
chip_gen: v5e
topology: v5e:2x2
jax: 0.10.0
libtpu: 0.0.40
codegen_flags: <defaults>
</compile_context>

<pallas_src>
import jax
import jax.numpy as jnp
from jax.experimental import pallas as pl
from jax.experimental.pallas import tpu as pltpu

EPS = 1e-5


def _pick_images_per_block(n: int, h: int, target_rows: int = 256) -> int:
    """Largest divisor Nb of n with Nb*h <= target_rows (MXU M target) whose
    block is 8-row aligned (or the full batch, which is always legal)."""
    divs = [d for d in range(1, n + 1) if n % d == 0]
    cands = [d for d in divs if (d * h) % 8 == 0] or [n]
    small = [d for d in cands if d * h <= target_rows]
    return max(small) if small else min(cands)


def conv_layer_forward(x_nchw, w_oihw, bias, gamma, beta, *, mxu_dtype=jnp.bfloat16):
    """ConvLayer forward. x_nchw: (N, Cin, H, W) f32 -> (N, Cout, H, W) f32.

    `bias` is accepted for nn.Conv2d API parity but is mathematically cancelled
    by the training-mode BatchNorm mean subtraction, so it is not used.
    """
    del bias
    N, Cin, H, W = x_nchw.shape
    Cout = w_oihw.shape[0]
    Wp = W + 2
    WCin = W * Cin            # unpadded row width (channels-minor)
    WpCin = Wp * Cin          # width-padded row width
    WC = W * Cout             # lane-dense output row width

    Nb = _pick_images_per_block(N, H)      # images per grid step -> M = Nb*H
    nblk = N // Nb
    MB = Nb * H                            # matmul M per step

    itemsize = jnp.dtype(mxu_dtype).itemsize
    vmem_bytes = (
        N * H * WC * 4                     # y_buf: VMEM-resident conv activation (f32)
        + 4 * WC * 4                       # stats + scale/shift scratch
        + 3 * MB * WpCin * itemsize        # ky-shifted input slabs
        + 2 * 3 * WpCin * WC * itemsize    # banded weight (double-buffered)
        + 2 * Nb * H * WCin * itemsize     # x input blocks (double-buffered)
        + 2 * MB * WC * 4                  # output blocks (double-buffered)
    )
    if vmem_bytes > 24 * 1024 * 1024:
        # TODO(synk): for activation/weight footprints that exceed VMEM (large
        # N*H*W*Cout or large W), spill y to HBM (two-pass variant) and W-tile
        # the banded contraction (K = (Wt+2)*Cin) instead of the full band.
        raise NotImplementedError(
            "fused ConvLayer kernel requires the conv activation resident in VMEM")

    # ---- input layout: NCHW -> channels-minor rows (N, H, W*Cin), cast for MXU.
    # (No jnp.pad: the spatial halo is materialised inside the kernel.)
    x2 = jnp.transpose(x_nchw, (0, 2, 3, 1)).reshape(N, H, WCin).astype(mxu_dtype)

    # ---- banded weights over the padded width:
    # B[ky][(wp)*Cin + ci, w*Cout + co] = W[co, ci, ky, wp - w]   (wp = w + kx)
    w_k = jnp.transpose(w_oihw, (2, 3, 1, 0)).astype(jnp.float32)        # (ky,kx,Cin,Cout)
    shift_mats = jnp.stack(
        [jnp.eye(Wp, W, k=-kx, dtype=jnp.float32) for kx in range(3)])   # (3, Wp, W)
    bmat = jnp.einsum("xab,yxio->yaibo", shift_mats, w_k).reshape(3, WpCin, WC)
    bmat = bmat.astype(mxu_dtype)
    # TODO(synk): W-tile the banded contraction for large W so the band's
    # ~(W+2)/3x zero-FLOP inflation and quadratic weight size do not bind
    # (also keeps the weight under v7x's 64 MiB VMEM).

    # 0/1 matrices for per-channel stat reduction / lane-dense broadcast
    # (tiny MXU matmuls in-kernel instead of relayouting reshapes).
    rmat = jnp.tile(jnp.eye(Cout, dtype=jnp.float32), (W, 1))            # (WC, Cout)
    rtmat = jnp.tile(jnp.eye(Cout, dtype=jnp.float32), (1, W))           # (Cout, WC)
    gb = jnp.stack([gamma.astype(jnp.float32), beta.astype(jnp.float32)])  # (2, Cout)

    inv_cnt = 1.0 / float(N * H * W)
    c0, c1 = Cin, Cin + WCin   # interior columns of the width-padded row

    def _fused_kernel(x_ref, b_ref, r_ref, rt_ref, gb_ref, o_ref,
                      xk_ref, y_ref, stats_ref, ss_ref):
        phase = pl.program_id(0)     # 0: conv + stats, 1: BN + ReLU
        blk = pl.program_id(1)       # image-block index
        row0 = blk * MB

        @pl.when(phase == 0)
        def _conv_and_stats():
            @pl.when(blk == 0)
            def _init():
                # Zero once: the untouched borders of xk realise the 1-pixel
                # spatial halo (conv padding=1) for every block.
                xk_ref[...] = jnp.zeros_like(xk_ref)
                stats_ref[...] = jnp.zeros_like(stats_ref)

            # Pre-shift the three ky taps into clean (Nb*H, (W+2)*Cin) slabs.
            # Interior writes only; halo rows/columns stay zero from _init.
            for i in range(Nb):
                r = i * H
                xk_ref[1, r:r + H, c0:c1] = x_ref[i]                     # ky = 1
                if H > 1:
                    xk_ref[0, r + 1:r + H, c0:c1] = x_ref[i, 0:H - 1, :]  # ky = 0
                    xk_ref[2, r:r + H - 1, c0:c1] = x_ref[i, 1:H, :]      # ky = 2

            # conv3x3 == sum_ky xk[ky] @ B[ky]  (kx taps + Cin folded into B),
            # M = Nb*H rows per matmul, f32 accumulation.
            acc = jnp.dot(xk_ref[0], b_ref[0], preferred_element_type=jnp.float32)
            acc = acc + jnp.dot(xk_ref[1], b_ref[1], preferred_element_type=jnp.float32)
            acc = acc + jnp.dot(xk_ref[2], b_ref[2], preferred_element_type=jnp.float32)

            # Keep the conv activation resident in VMEM (no HBM round trip).
            y_ref[pl.ds(row0, MB), :] = acc

            # Per-(w,c) column sums / sums of squares for the batch statistics.
            stats_ref[0:1, :] = stats_ref[0:1, :] + jnp.sum(acc, axis=0, keepdims=True)
            stats_ref[1:2, :] = stats_ref[1:2, :] + jnp.sum(acc * acc, axis=0, keepdims=True)

        @pl.when(phase == 1)
        def _bn_relu():
            @pl.when(blk == 0)
            def _finalize_stats():
                # per-(w,c) -> per-channel via a tiny 0/1 matmul (no relayouts)
                ch = jnp.dot(stats_ref[...], r_ref[...],
                             preferred_element_type=jnp.float32)          # (2, Cout)
                mean = ch[0:1, :] * inv_cnt
                var = jnp.maximum(ch[1:2, :] * inv_cnt - mean * mean, 0.0)  # biased var
                scale = gb_ref[0:1, :] * jax.lax.rsqrt(var + EPS)
                shift = gb_ref[1:2, :] - mean * scale
                # broadcast per-channel -> lane-dense (1, W*Cout)
                ss_ref[0:1, :] = jnp.dot(scale, rt_ref[...],
                                         preferred_element_type=jnp.float32)
                ss_ref[1:2, :] = jnp.dot(shift, rt_ref[...],
                                         preferred_element_type=jnp.float32)

            y = y_ref[pl.ds(row0, MB), :]                                  # (MB, WC) f32
            o_ref[...] = jnp.maximum(y * ss_ref[0:1, :] + ss_ref[1:2, :],
                                     0.0).astype(o_ref.dtype)

    out2 = pl.pallas_call(
        _fused_kernel,
        out_shape=jax.ShapeDtypeStruct((N * H, WC), jnp.float32),
        grid_spec=pltpu.PrefetchScalarGridSpec(
            num_scalar_prefetch=0,
            grid=(2, nblk),                      # (phase, image block)
            in_specs=[
                # phase 0 walks the image blocks; phase 1 pins the index to the
                # last block so x is not re-fetched from HBM.
                pl.BlockSpec((Nb, H, WCin),
                             lambda p, b: (b * (1 - p) + (nblk - 1) * p, 0, 0)),
                pl.BlockSpec((3, WpCin, WC), lambda p, b: (0, 0, 0)),   # fetched once
                pl.BlockSpec((WC, Cout), lambda p, b: (0, 0)),          # fetched once
                pl.BlockSpec((Cout, WC), lambda p, b: (0, 0)),          # fetched once
                pl.BlockSpec((2, Cout), lambda p, b: (0, 0)),           # fetched once
            ],
            # Output blocks are only written (and flushed) during phase 1.
            out_specs=pl.BlockSpec((MB, WC), lambda p, b: (b * p, 0)),
            scratch_shapes=[
                pltpu.VMEM((3, MB, WpCin), mxu_dtype),   # ky-shifted input slabs
                pltpu.VMEM((N * H, WC), jnp.float32),    # VMEM-resident conv activation
                pltpu.VMEM((2, WC), jnp.float32),        # batch-stat accumulators
                pltpu.VMEM((2, WC), jnp.float32),        # fused BN scale / shift
            ],
        ),
        compiler_params=pltpu.CompilerParams(
            # The phase axis (and the stats carry) is sequential, so both axes
            # are "arbitrary": the fused design trades megacore batch-splitting
            # for one fewer HBM pass over the activation.
            dimension_semantics=("arbitrary", "arbitrary"),
            vmem_limit_bytes=32 * 1024 * 1024,
        ),
    )(x2, bmat, rmat, rtmat, gb)

    # Lane-dense (N*H, W*Cout) -> NCHW for PyTorch API parity (one XLA pass;
    # a channels-last end-to-end model would keep out2 as-is).
    return jnp.transpose(out2.reshape(N, H, W, Cout), (0, 3, 1, 2))


def reference_forward(x_nchw, w_oihw, bias, gamma, beta):
    """Pure-JAX reference (lax conv + batch-stat BN + ReLU) for validation."""
    y = jax.lax.conv_general_dilated(
        x_nchw, w_oihw, window_strides=(1, 1), padding=((1, 1), (1, 1)),
        dimension_numbers=("NCHW", "OIHW", "NCHW"),
    ) + bias[None, :, None, None]
    mean = jnp.mean(y, axis=(0, 2, 3), keepdims=True)
    var = jnp.mean((y - mean) ** 2, axis=(0, 2, 3), keepdims=True)
    y = (y - mean) * jax.lax.rsqrt(var + EPS)
    y = y * gamma[None, :, None, None] + beta[None, :, None, None]
    return jnp.maximum(y, 0.0)


if __name__ == "__main__":
    # Small shapes consistent with the module: ConvLayer(input_size=4, output_size=8)
    N, Cin, H, W, Cout = 2, 4, 16, 16, 8

    key = jax.random.PRNGKey(0)
    k_x, k_w, k_b = jax.random.split(key, 3)

    x = jax.random.normal(k_x, (N, Cin, H, W), dtype=jnp.float32)

    # Deterministic parameter init mirroring nn.Conv2d / nn.BatchNorm2d defaults.
    fan_in = Cin * 3 * 3
    bound = 1.0 / (fan_in ** 0.5)
    w = jax.random.uniform(k_w, (Cout, Cin, 3, 3), jnp.float32, -bound, bound)
    b = jax.random.uniform(k_b, (Cout,), jnp.float32, -bound, bound)
    gamma = jnp.ones((Cout,), jnp.float32)   # BN weight default
    beta = jnp.zeros((Cout,), jnp.float32)   # BN bias default

    ref = reference_forward(x, w, b, gamma, beta)

    # f32 MXU operands: tight check of the fused kernel structure.
    out_f32 = jax.block_until_ready(
        conv_layer_forward(x, w, b, gamma, beta, mxu_dtype=jnp.float32))
    assert out_f32.shape == (N, Cout, H, W)
    assert jnp.allclose(out_f32, ref, atol=2e-4, rtol=2e-4), (
        f"f32 max abs err {jnp.max(jnp.abs(out_f32 - ref))}"
    )

    # bf16 MXU operands (default; v6e/v7x throughput), f32 accumulation:
    # looser tolerance for the bf16 operand rounding.
    out_bf16 = jax.block_until_ready(conv_layer_forward(x, w, b, gamma, beta))
    assert out_bf16.shape == (N, Cout, H, W)
    assert jnp.allclose(out_bf16, ref, atol=5e-2, rtol=5e-2), (
        f"bf16 max abs err {jnp.max(jnp.abs(out_bf16 - ref))}"
    )

    print("KERNEL_OK")
</pallas_src>

<mosaic_0001>
module attributes {stable_mosaic.version = 11 : i64} {
  func.func @_fused_kernel(%arg0: i32, %arg1: i32, %arg2: memref<2x16x64xf32, #tpu.memory_space<vmem>>, %arg3: memref<3x72x128xf32, #tpu.memory_space<vmem>>, %arg4: memref<128x8xf32, #tpu.memory_space<vmem>>, %arg5: memref<8x128xf32, #tpu.memory_space<vmem>>, %arg6: memref<2x8xf32, #tpu.memory_space<vmem>>, %arg7: memref<32x128xf32, #tpu.memory_space<vmem>>, %arg8: memref<3x32x72xf32, #tpu.memory_space<vmem>>, %arg9: memref<32x128xf32, #tpu.memory_space<vmem>>, %arg10: memref<2x128xf32, #tpu.memory_space<vmem>>, %arg11: memref<2x128xf32, #tpu.memory_space<vmem>>) attributes {dimension_semantics = [#tpu.dimension_semantics<arbitrary>, #tpu.dimension_semantics<arbitrary>], iteration_bounds = array<i64: 2, 1>, scalar_prefetch = 0 : i64, scratch_operands = 4 : i64, tpu.core_type = #tpu.core_type<tc>, window_params = [{transform_indices = @transform_0, window_bounds = array<i64: 2, 16, 64>}, {pipeline_mode = #tpu.pipeline_mode<synchronous>, transform_indices = @transform_1, window_bounds = array<i64: 3, 72, 128>}, {pipeline_mode = #tpu.pipeline_mode<synchronous>, transform_indices = @transform_2, window_bounds = array<i64: 128, 8>}, {pipeline_mode = #tpu.pipeline_mode<synchronous>, transform_indices = @transform_3, window_bounds = array<i64: 8, 128>}, {pipeline_mode = #tpu.pipeline_mode<synchronous>, transform_indices = @transform_4, window_bounds = array<i64: 2, 8>}, {transform_indices = @transform_5, window_bounds = array<i64: 32, 128>}]} {
    %c32_i32 = arith.constant 32 : i32
    %0 = arith.muli %arg1, %c32_i32 : i32
    %c0_i32 = arith.constant 0 : i32
    %1 = arith.cmpi eq, %arg0, %c0_i32 : i32
    %2 = arith.extui %1 : i1 to i32
    %c0_i32_0 = arith.constant 0 : i32
    %3 = arith.cmpi ne, %2, %c0_i32_0 : i32
    scf.if %3 {
      %c0_i32_2 = arith.constant 0 : i32
      %7 = arith.cmpi eq, %arg1, %c0_i32_2 : i32
      %8 = arith.extui %7 : i1 to i32
      %c0_i32_3 = arith.constant 0 : i32
      %9 = arith.cmpi ne, %8, %c0_i32_3 : i32
      scf.if %9 {
        %cst_65 = arith.constant 0.000000e+00 : f32
        %70 = vector.broadcast %cst_65 : f32 to vector<3x32x72xf32>
        %c0_66 = arith.constant 0 : index
        %c0_67 = arith.constant 0 : index
        %c0_68 = arith.constant 0 : index
        %71 = vector.load %arg8[%c0_66, %c0_67, %c0_68] : memref<3x32x72xf32, #tpu.memory_space<vmem>>, vector<3x32x72xf32>
        tpu.vector_store %arg8[%c0_66, %c0_67, %c0_68], %70 {strides = array<i32>} : memref<3x32x72xf32, #tpu.memory_space<vmem>>, vector<3x32x72xf32>,
        %cst_69 = arith.constant 0.000000e+00 : f32
        %72 = vector.broadcast %cst_69 : f32 to vector<2x128xf32>
        %c0_70 = arith.constant 0 : index
        %c0_71 = arith.constant 0 : index
        %73 = vector.load %arg10[%c0_70, %c0_71] : memref<2x128xf32, #tpu.memory_space<vmem>>, vector<2x128xf32>
        tpu.vector_store %arg10[%c0_70, %c0_71], %72 {strides = array<i32>} : memref<2x128xf32, #tpu.memory_space<vmem>>, vector<2x128xf32>,
      } else {
      }
      %c0 = arith.constant 0 : index
      %c0_4 = arith.constant 0 : index
      %c0_5 = arith.constant 0 : index
      %10 = vector.load %arg2[%c0, %c0_4, %c0_5] : memref<2x16x64xf32, #tpu.memory_space<vmem>>, vector<1x16x64xf32>
      %11 = vector.shape_cast %10 : vector<1x16x64xf32> to vector<16x64xf32>
      %c1 = arith.constant 1 : index
      %c0_6 = arith.constant 0 : index
      %c4 = arith.constant 4 : index
      %12 = vector.load %arg8[%c1, %c0_6, %c4] : memref<3x32x72xf32, #tpu.memory_space<vmem>>, vector<1x16x64xf32>
      %13 = vector.shape_cast %12 : vector<1x16x64xf32> to vector<16x64xf32>
      %14 = vector.shape_cast %11 : vector<16x64xf32> to vector<1x16x64xf32>
      tpu.vector_store %arg8[%c1, %c0_6, %c4], %14 {strides = array<i32>} : memref<3x32x72xf32, #tpu.memory_space<vmem>>, vector<1x16x64xf32>,
      %c0_7 = arith.constant 0 : index
      %c0_8 = arith.constant 0 : index
      %c0_9 = arith.constant 0 : index
      %15 = vector.load %arg2[%c0_7, %c0_8, %c0_9] : memref<2x16x64xf32, #tpu.memory_space<vmem>>, vector<1x15x64xf32>
      %16 = vector.shape_cast %15 : vector<1x15x64xf32> to vector<15x64xf32>
      %c0_10 = arith.constant 0 : index
      %c1_11 = arith.constant 1 : index
      %c4_12 = arith.constant 4 : index
      %17 = vector.load %arg8[%c0_10, %c1_11, %c4_12] : memref<3x32x72xf32, #tpu.memory_space<vmem>>, vector<1x15x64xf32>
      %18 = vector.shape_cast %17 : vector<1x15x64xf32> to vector<15x64xf32>
      %19 = vector.shape_cast %16 : vector<15x64xf32> to vector<1x15x64xf32>
      tpu.vector_store %arg8[%c0_10, %c1_11, %c4_12], %19 {strides = array<i32>} : memref<3x32x72xf32, #tpu.memory_space<vmem>>, vector<1x15x64xf32>,
      %c0_13 = arith.constant 0 : index
      %c1_14 = arith.constant 1 : index
      %c0_15 = arith.constant 0 : index
      %20 = vector.load %arg2[%c0_13, %c1_14, %c0_15] : memref<2x16x64xf32, #tpu.memory_space<vmem>>, vector<1x15x64xf32>
      %21 = vector.shape_cast %20 : vector<1x15x64xf32> to vector<15x64xf32>
      %c2 = arith.constant 2 : index
      %c0_16 = arith.constant 0 : index
      %c4_17 = arith.constant 4 : index
      %22 = vector.load %arg8[%c2, %c0_16, %c4_17] : memref<3x32x72xf32, #tpu.memory_space<vmem>>, vector<1x15x64xf32>
      %23 = vector.shape_cast %22 : vector<1x15x64xf32> to vector<15x64xf32>
      %24 = vector.shape_cast %21 : vector<15x64xf32> to vector<1x15x64xf32>
      tpu.vector_store %arg8[%c2, %c0_16, %c4_17], %24 {strides = array<i32>} : memref<3x32x72xf32, #tpu.memory_space<vmem>>, vector<1x15x64xf32>,
      %c1_18 = arith.constant 1 : index
      %c0_19 = arith.constant 0 : index
      %c0_20 = arith.constant 0 : index
      %25 = vector.load %arg2[%c1_18, %c0_19, %c0_20] : memref<2x16x64xf32, #tpu.memory_space<vmem>>, vector<1x16x64xf32>
      %26 = vector.shape_cast %25 : vector<1x16x64xf32> to vector<16x64xf32>
      %c1_21 = arith.constant 1 : index
      %c16 = arith.constant 16 : index
      %c4_22 = arith.constant 4 : index
      %27 = vector.load %arg8[%c1_21, %c16, %c4_22] : memref<3x32x72xf32, #tpu.memory_space<vmem>>, vector<1x16x64xf32>
      %28 = vector.shape_cast %27 : vector<1x16x64xf32> to vector<16x64xf32>
      %29 = vector.shape_cast %26 : vector<16x64xf32> to vector<1x16x64xf32>
      tpu.vector_store %arg8[%c1_21, %c16, %c4_22], %29 {strides = array<i32>} : memref<3x32x72xf32, #tpu.memory_space<vmem>>, vector<1x16x64xf32>,
      %c1_23 = arith.constant 1 : index
      %c0_24 = arith.constant 0 : index
      %c0_25 = arith.constant 0 : index
      %30 = vector.load %arg2[%c1_23, %c0_24, %c0_25] : memref<2x16x64xf32, #tpu.memory_space<vmem>>, vector<1x15x64xf32>
      %31 = vector.shape_cast %30 : vector<1x15x64xf32> to vector<15x64xf32>
      %c0_26 = arith.constant 0 : index
      %c17 = arith.constant 17 : index
      %c4_27 = arith.constant 4 : index
      %32 = vector.load %arg8[%c0_26, %c17, %c4_27] : memref<3x32x72xf32, #tpu.memory_space<vmem>>, vector<1x15x64xf32>
      %33 = vector.shape_cast %32 : vector<1x15x64xf32> to vector<15x64xf32>
      %34 = vector.shape_cast %31 : vector<15x64xf32> to vector<1x15x64xf32>
      tpu.vector_store %arg8[%c0_26, %c17, %c4_27], %34 {strides = array<i32>} : memref<3x32x72xf32, #tpu.memory_space<vmem>>, vector<1x15x64xf32>,
      %c1_28 = arith.constant 1 : index
      %c1_29 = arith.constant 1 : index
      %c0_30 = arith.constant 0 : index
      %35 = vector.load %arg2[%c1_28, %c1_29, %c0_30] : memref<2x16x64xf32, #tpu.memory_space<vmem>>, vector<1x15x64xf32>
      %36 = vector.shape_cast %35 : vector<1x15x64xf32> to vector<15x64xf32>
      %c2_31 = arith.constant 2 : index
      %c16_32 = arith.constant 16 : index
      %c4_33 = arith.constant 4 : index
      %37 = vector.load %arg8[%c2_31, %c16_32, %c4_33] : memref<3x32x72xf32, #tpu.memory_space<vmem>>, vector<1x15x64xf32>
      %38 = vector.shape_cast %37 : vector<1x15x64xf32> to vector<15x64xf32>
      %39 = vector.shape_cast %36 : vector<15x64xf32> to vector<1x15x64xf32>
      tpu.vector_store %arg8[%c2_31, %c16_32, %c4_33], %39 {strides = array<i32>} : memref<3x32x72xf32, #tpu.memory_space<vmem>>, vector<1x15x64xf32>,
      %c0_34 = arith.constant 0 : index
      %c0_35 = arith.constant 0 : index
      %c0_36 = arith.constant 0 : index
      %40 = vector.load %arg8[%c0_34, %c0_35, %c0_36] : memref<3x32x72xf32, #tpu.memory_space<vmem>>, vector<1x32x72xf32>
      %41 = vector.shape_cast %40 : vector<1x32x72xf32> to vector<32x72xf32>
      %c0_37 = arith.constant 0 : index
      %c0_38 = arith.constant 0 : index
      %c0_39 = arith.constant 0 : index
      %42 = vector.load %arg3[%c0_37, %c0_38, %c0_39] : memref<3x72x128xf32, #tpu.memory_space<vmem>>, vector<1x72x128xf32>
      %43 = vector.shape_cast %42 : vector<1x72x128xf32> to vector<72x128xf32>
      %cst = arith.constant dense<0.000000e+00> : vector<32x128xf32>
      %44 = tpu.matmul %41, %43, %cst {dimension_numbers = #tpu.dot_dimension_numbers<[1], [0], [0], [1], [0, 0, 1, 1], [], []>} : vector<32x72xf32>, vector<72x128xf32>, vector<32x128xf32> -> vector<32x128xf32>
      %c1_40 = arith.constant 1 : index
      %c0_41 = arith.constant 0 : index
      %c0_42 = arith.constant 0 : index
      %45 = vector.load %arg8[%c1_40, %c0_41, %c0_42] : memref<3x32x72xf32, #tpu.memory_space<vmem>>, vector<1x32x72xf32>
      %46 = vector.shape_cast %45 : vector<1x32x72xf32> to vector<32x72xf32>
      %c1_43 = arith.constant 1 : index
      %c0_44 = arith.constant 0 : index
      %c0_45 = arith.constant 0 : index
      %47 = vector.load %arg3[%c1_43, %c0_44, %c0_45] : memref<3x72x128xf32, #tpu.memory_space<vmem>>, vector<1x72x128xf32>
      %48 = vector.shape_cast %47 : vector<1x72x128xf32> to vector<72x128xf32>
      %cst_46 = arith.constant dense<0.000000e+00> : vector<32x128xf32>
      %49 = tpu.matmul %46, %48, %cst_46 {dimension_numbers = #tpu.dot_dimension_numbers<[1], [0], [0], [1], [0, 0, 1, 1], [], []>} : vector<32x72xf32>, vector<72x128xf32>, vector<32x128xf32> -> vector<32x128xf32>
      %50 = arith.addf %44, %49 : vector<32x128xf32>
      %c2_47 = arith.constant 2 : index
      %c0_48 = arith.constant 0 : index
      %c0_49 = arith.constant 0 : index
      %51 = vector.load %arg8[%c2_47, %c0_48, %c0_49] : memref<3x32x72xf32, #tpu.memory_space<vmem>>, vector<1x32x72xf32>
      %52 = vector.shape_cast %51 : vector<1x32x72xf32> to vector<32x72xf32>
      %c2_50 = arith.constant 2 : index
      %c0_51 = arith.constant 0 : index
      %c0_52 = arith.constant 0 : index
      %53 = vector.load %arg3[%c2_50, %c0_51, %c0_52] : memref<3x72x128xf32, #tpu.memory_space<vmem>>, vector<1x72x128xf32>
      %54 = vector.shape_cast %53 : vector<1x72x128xf32> to vector<72x128xf32>
      %cst_53 = arith.constant dense<0.000000e+00> : vector<32x128xf32>
      %55 = tpu.matmul %52, %54, %cst_53 {dimension_numbers = #tpu.dot_dimension_numbers<[1], [0], [0], [1], [0, 0, 1, 1], [], []>} : vector<32x72xf32>, vector<72x128xf32>, vector<32x128xf32> -> vector<32x128xf32>
      %56 = arith.addf %50, %55 : vector<32x128xf32>
      %57 = arith.index_cast %0 : i32 to index
      %c0_54 = arith.constant 0 : index
      %58 = vector.load %arg9[%57, %c0_54] : memref<32x128xf32, #tpu.memory_space<vmem>>, vector<32x128xf32>
      tpu.vector_store %arg9[%57, %c0_54], %56 {strides = array<i32>} : memref<32x128xf32, #tpu.memory_space<vmem>>, vector<32x128xf32>,
      %c0_55 = arith.constant 0 : index
      %c0_56 = arith.constant 0 : index
      %59 = vector.load %arg10[%c0_55, %c0_56] : memref<2x128xf32, #tpu.memory_space<vmem>>, vector<1x128xf32>
      %cst_57 = arith.constant dense<0.000000e+00> : vector<128xf32>
      %60 = vector.multi_reduction <add>, %56, %cst_57 [0] : vector<32x128xf32> to vector<128xf32>
      %61 = vector.shape_cast %60 : vector<128xf32> to vector<1x128xf32>
      %62 = arith.addf %59, %61 : vector<1x128xf32>
      %c0_58 = arith.constant 0 : index
      %c0_59 = arith.constant 0 : index
      %63 = vector.load %arg10[%c0_58, %c0_59] : memref<2x128xf32, #tpu.memory_space<vmem>>, vector<1x128xf32>
      tpu.vector_store %arg10[%c0_58, %c0_59], %62 {strides = array<i32>} : memref<2x128xf32, #tpu.memory_space<vmem>>, vector<1x128xf32>,
      %c1_60 = arith.constant 1 : index
      %c0_61 = arith.constant 0 : index
      %64 = vector.load %arg10[%c1_60, %c0_61] : memref<2x128xf32, #tpu.memory_space<vmem>>, vector<1x128xf32>
      %65 = arith.mulf %56, %56 : vector<32x128xf32>
      %cst_62 = arith.constant dense<0.000000e+00> : vector<128xf32>
      %66 = vector.multi_reduction <add>, %65, %cst_62 [0] : vector<32x128xf32> to vector<128xf32>
      %67 = vector.shape_cast %66 : vector<128xf32> to vector<1x128xf32>
      %68 = arith.addf %64, %67 : vector<1x128xf32>
      %c1_63 = arith.constant 1 : index
      %c0_64 = arith.constant 0 : index
      %69 = vector.load %arg10[%c1_63, %c0_64] : memref<2x128xf32, #tpu.memory_space<vmem>>, vector<1x128xf32>
      tpu.vector_store %arg10[%c1_63, %c0_64], %68 {strides = array<i32>} : memref<2x128xf32, #tpu.memory_space<vmem>>, vector<1x128xf32>,
    } else {
    }
    %c1_i32 = arith.constant 1 : i32
    %4 = arith.cmpi eq, %arg0, %c1_i32 : i32
    %5 = arith.extui %4 : i1 to i32
    %c0_i32_1 = arith.constant 0 : i32
    %6 = arith.cmpi ne, %5, %c0_i32_1 : i32
    scf.if %6 {
      %c0_i32_2 = arith.constant 0 : i32
      %7 = arith.cmpi eq, %arg1, %c0_i32_2 : i32
      %8 = arith.extui %7 : i1 to i32
      %c0_i32_3 = arith.constant 0 : i32
      %9 = arith.cmpi ne, %8, %c0_i32_3 : i32
      scf.if %9 {
        %c0_9 = arith.constant 0 : index
        %c0_10 = arith.constant 0 : index
        %21 = vector.load %arg10[%c0_9, %c0_10] : memref<2x128xf32, #tpu.memory_space<vmem>>, vector<2x128xf32>
        %c0_11 = arith.constant 0 : index
        %c0_12 = arith.constant 0 : index
        %22 = vector.load %arg4[%c0_11, %c0_12] : memref<128x8xf32, #tpu.memory_space<vmem>>, vector<128x8xf32>
        %cst_13 = arith.constant dense<0.000000e+00> : vector<2x8xf32>
        %23 = tpu.matmul %21, %22, %cst_13 {dimension_numbers = #tpu.dot_dimension_numbers<[1], [0], [0], [1], [0, 0, 1, 1], [], []>} : vector<2x128xf32>, vector<128x8xf32>, vector<2x8xf32> -> vector<2x8xf32>
        %24 = vector.extract_strided_slice %23 {offsets = [0, 0], sizes = [1, 8], strides = [1, 1]} : vector<2x8xf32> to vector<1x8xf32>
        %cst_14 = arith.constant 0.001953125 : f32
        %25 = vector.broadcast %cst_14 : f32 to vector<1x8xf32>
        %26 = arith.mulf %24, %25 : vector<1x8xf32>
        %27 = vector.extract_strided_slice %23 {offsets = [1, 0], sizes = [1, 8], strides = [1, 1]} : vector<2x8xf32> to vector<1x8xf32>
        %cst_15 = arith.constant 0.001953125 : f32
        %28 = vector.broadcast %cst_15 : f32 to vector<1x8xf32>
        %29 = arith.mulf %27, %28 : vector<1x8xf32>
        %30 = arith.mulf %26, %26 : vector<1x8xf32>
        %31 = arith.subf %29, %30 : vector<1x8xf32>
        %cst_16 = arith.constant 0.000000e+00 : f32
        %32 = vector.broadcast %cst_16 : f32 to vector<1x8xf32>
        %33 = arith.maximumf %31, %32 : vector<1x8xf32>
        %c0_17 = arith.constant 0 : index
        %c0_18 = arith.constant 0 : index
        %34 = vector.load %arg6[%c0_17, %c0_18] : memref<2x8xf32, #tpu.memory_space<vmem>>, vector<1x8xf32>
        %cst_19 = arith.constant 9.99999974E-6 : f32
        %35 = vector.broadcast %cst_19 : f32 to vector<1x8xf32>
        %36 = arith.addf %33, %35 : vector<1x8xf32>
        %37 = math.rsqrt %36 : vector<1x8xf32>
        %38 = arith.mulf %34, %37 : vector<1x8xf32>
        %c1_20 = arith.constant 1 : index
        %c0_21 = arith.constant 0 : index
        %39 = vector.load %arg6[%c1_20, %c0_21] : memref<2x8xf32, #tpu.memory_space<vmem>>, vector<1x8xf32>
        %40 = arith.mulf %26, %38 : vector<1x8xf32>
        %41 = arith.subf %39, %40 : vector<1x8xf32>
        %c0_22 = arith.constant 0 : index
        %c0_23 = arith.constant 0 : index
        %42 = vector.load %arg5[%c0_22, %c0_23] : memref<8x128xf32, #tpu.memory_space<vmem>>, vector<8x128xf32>
        %cst_24 = arith.constant dense<0.000000e+00> : vector<1x128xf32>
        %43 = tpu.matmul %38, %42, %cst_24 {dimension_numbers = #tpu.dot_dimension_numbers<[1], [0], [0], [1], [0, 0, 1, 1], [], []>} : vector<1x8xf32>, vector<8x128xf32>, vector<1x128xf32> -> vector<1x128xf32>
        %c0_25 = arith.constant 0 : index
        %c0_26 = arith.constant 0 : index
        %44 = vector.load %arg11[%c0_25, %c0_26] : memref<2x128xf32, #tpu.memory_space<vmem>>, vector<1x128xf32>
        tpu.vector_store %arg11[%c0_25, %c0_26], %43 {strides = array<i32>} : memref<2x128xf32, #tpu.memory_space<vmem>>, vector<1x128xf32>,
        %c0_27 = arith.constant 0 : index
        %c0_28 = arith.constant 0 : index
        %45 = vector.load %arg5[%c0_27, %c0_28] : memref<8x128xf32, #tpu.memory_space<vmem>>, vector<8x128xf32>
        %cst_29 = arith.constant dense<0.000000e+00> : vector<1x128xf32>
        %46 = tpu.matmul %41, %45, %cst_29 {dimension_numbers = #tpu.dot_dimension_numbers<[1], [0], [0], [1], [0, 0, 1, 1], [], []>} : vector<1x8xf32>, vector<8x128xf32>, vector<1x128xf32> -> vector<1x128xf32>
        %c1_30 = arith.constant 1 : index
        %c0_31 = arith.constant 0 : index
        %47 = vector.load %arg11[%c1_30, %c0_31] : memref<2x128xf32, #tpu.memory_space<vmem>>, vector<1x128xf32>
        tpu.vector_store %arg11[%c1_30, %c0_31], %46 {strides = array<i32>} : memref<2x128xf32, #tpu.memory_space<vmem>>, vector<1x128xf32>,
      } else {
      }
      %10 = arith.index_cast %0 : i32 to index
      %c0 = arith.constant 0 : index
      %11 = vector.load %arg9[%10, %c0] : memref<32x128xf32, #tpu.memory_space<vmem>>, vector<32x128xf32>
      %c0_4 = arith.constant 0 : index
      %c0_5 = arith.constant 0 : index
      %12 = vector.load %arg11[%c0_4, %c0_5] : memref<2x128xf32, #tpu.memory_space<vmem>>, vector<1x128xf32>
      %13 = vector.broadcast %12 : vector<1x128xf32> to vector<32x128xf32>
      %14 = arith.mulf %11, %13 : vector<32x128xf32>
      %c1 = arith.constant 1 : index
      %c0_6 = arith.constant 0 : index
      %15 = vector.load %arg11[%c1, %c0_6] : memref<2x128xf32, #tpu.memory_space<vmem>>, vector<1x128xf32>
      %16 = vector.broadcast %15 : vector<1x128xf32> to vector<32x128xf32>
      %17 = arith.addf %14, %16 : vector<32x128xf32>
      %cst = arith.constant 0.000000e+00 : f32
      %18 = vector.broadcast %cst : f32 to vector<32x128xf32>
      %19 = arith.maximumf %17, %18 : vector<32x128xf32>
      %c0_7 = arith.constant 0 : index
      %c0_8 = arith.constant 0 : index
      %20 = vector.load %arg7[%c0_7, %c0_8] : memref<32x128xf32, #tpu.memory_space<vmem>>, vector<32x128xf32>
      tpu.vector_store %arg7[%c0_7, %c0_8], %19 {strides = array<i32>} : memref<32x128xf32, #tpu.memory_space<vmem>>, vector<32x128xf32>,
    } else {
    }
    return
  }
  func.func @transform_0(%arg0: i32, %arg1: i32) -> (i32, i32, i32) {
    %c1_i32 = arith.constant 1 : i32
    %0 = arith.subi %c1_i32, %arg0 : i32
    %1 = arith.muli %arg1, %0 : i32
    %c0_i32 = arith.constant 0 : i32
    %2 = arith.muli %c0_i32, %arg0 : i32
    %3 = arith.addi %1, %2 : i32
    %c0_i32_0 = arith.constant 0 : i32
    %c0_i32_1 = arith.constant 0 : i32
    %c0_i32_2 = arith.constant 0 : i32
    return %3, %c0_i32_0, %c0_i32_1 : i32, i32, i32
  }
  func.func @transform_1(%arg0: i32, %arg1: i32) -> (i32, i32, i32) {
    %c0_i32 = arith.constant 0 : i32
    %c0_i32_0 = arith.constant 0 : i32
    %c0_i32_1 = arith.constant 0 : i32
    %c0_i32_2 = arith.constant 0 : i32
    return %c0_i32, %c0_i32_0, %c0_i32_1 : i32, i32, i32
  }
  func.func @transform_2(%arg0: i32, %arg1: i32) -> (i32, i32) {
    %c0_i32 = arith.constant 0 : i32
    %c0_i32_0 = arith.constant 0 : i32
    %c0_i32_1 = arith.constant 0 : i32
    return %c0_i32, %c0_i32_0 : i32, i32
  }
  func.func @transform_3(%arg0: i32, %arg1: i32) -> (i32, i32) {
    %c0_i32 = arith.constant 0 : i32
    %c0_i32_0 = arith.constant 0 : i32
    %c0_i32_1 = arith.constant 0 : i32
    return %c0_i32, %c0_i32_0 : i32, i32
  }
  func.func @transform_4(%arg0: i32, %arg1: i32) -> (i32, i32) {
    %c0_i32 = arith.constant 0 : i32
    %c0_i32_0 = arith.constant 0 : i32
    %c0_i32_1 = arith.constant 0 : i32
    return %c0_i32, %c0_i32_0 : i32, i32
  }
  func.func @transform_5(%arg0: i32, %arg1: i32) -> (i32, i32) {
    %0 = arith.muli %arg1, %arg0 : i32
    %c0_i32 = arith.constant 0 : i32
    %c0_i32_0 = arith.constant 0 : i32
    return %0, %c0_i32 : i32, i32
  }
}

</mosaic_0001>

<bundles_post_ra>
// kernel: tpu_custom_call.1
= control target key start
LH: loop header
LB: loop body
LE: loop exit
PB: predicated region body
PF: predicated region fallthrough
CT: control target
= control target key end

     0   :  { %10 = vsyncpa [#allocation7], 0  ;;  %s1234_s0 = inlined_call_operand.vmem [shape: f32[2,16,64], index: 0, kind: input, shape index: {}]   ;;  %s1235_s1 = inlined_call_operand.hbm [shape: f32[3,72,128], index: 1, kind: input, shape index: {}]   ;;  %s1236_s2 = inlined_call_operand.vmem [shape: f32[128,8], index: 2, kind: input, shape index: {}]   ;;  %s1237_s3 = inlined_call_operand.vmem [shape: f32[8,128], index: 3, kind: input, shape index: {}]   ;;  %s1238_s4 = inlined_call_operand.vmem [shape: f32[2,8], index: 4, kind: input, shape index: {}]   ;;  %s1239_s5 = inlined_call_operand.hbm [shape: f32[32,128], index: 5, kind: output, shape index: {}]  }
   0x1   :  { %11 = vsyncpa [#allocation8], 0 }
   0x2   :  { %13 = vsyncpa [#allocation8 + $0x1], 0  ;;  %s1055_s18 = smov 0   ;;  %s1057_s19 = smov 0  }
   0x3   :  { %s1059_s20 = smov 0  }
   0x4 LB: > { %s827_s21 = sadd.s32 4294967295, %s1015_s20   ;;  %s828_s22 = sadd.s32 4294967294, %s1015_s20   ;;  %s1015_s20 = sphi %s1059_s20, %s19_s20   ;;  %s1011_s19 = sphi %s1057_s19, %s1242_s19   ;;  %s1007_s18 = sphi %s1055_s18, %s1241_s18  }
   0x5   : > { %s31_s23 = sadd.s32 1, %s1011_s19  ;;  %p829_p0 = scmp.ge.s32.totalorder %s1015_s20, 1 }
   0x6   : > { %p33_p1 = scmp.ge.s32.totalorder %s31_s23, 2  ;;  %p178_p2 = scmp.lt.s32.totalorder %s1015_s20, 3 }
   0x7   : > { %p1077_p3 = scmp.eq.s32.totalorder %s827_s21, 0  ;;  %s189_s27 = sshll.u32 %s1235_s1, 4  ;;  %s190_s27 = int_to_ptr.hbm [resolvable:$true] %s189_s27 }
   0x8   : > { %s1244_s23 = smov (%p33_p1, %s31_s23), 0  ;;  %p179_p4 = pnand %p829_p0, %p178_p2 }
   0x9   : > { %s1017_s28 = smov [#allocation6]   ;;  %s1018_s30 = smov 128  }
   0xa   : > { %p878_p5 = pneg %p179_p4  ;;  %s191_s29 = sshll.u32 %s1017_s28, 4  ;;  %s192_s29 = int_to_ptr.vmem [resolvable:$true] %s191_s29 }
   0xb   : > { %s1019_s6 = smov 8   ;;  %230 = sbr.rel (%p179_p4) target bundleno = 684 (0x2ac), region = 40 }
   0xc   : > { %p879_p6 = pnand %p1077_p3, %p878_p5 }
   0xe   : > { %881 = dma.hbm_to_vmem [thread:$0]  (!%p879_p6), %s190_s27, 3456, %s192_s29, [#allocation7], %s1018_s30, %s1018_s30, %s1019_s6  }
  0x10   : > { %998 = dma.done.wait (%p1077_p3), [#allocation7], 3456  }
  0x11   : > { %1000 = vsyncadd (%p1077_p3), [#allocation7], 4294963840  ;;  %p835_p7 = scmp.ne.s32.totalorder %s1007_s18, 0 }
  0x12   : > { %s1020_s11 = smov (!%p835_p7), 4  }
  0x13   : > { %279 = sbr.rel (%p835_p7) target bundleno = 329 (0x149), region = 48 }
  0x18   : > { %v325_v0 = vld [vmem:[%s1234_s0 + $0x1] sm:$0xff]  ;;  %v498_v2 = vld [vmem:[#allocation6 + $0xd0] sm:$0xff]  ;;  %v497_v4 = vld [vmem:[#allocation6 + $0xc8] sm:$0xff]  ;;  %vm284_vm0 = vcmask 588800   ;;  %v1021_v14 = vmov 0.0   ;;  %vm323_vm1 = vcmask 555040  }
  0x19   : > { %v299_v1 = vld [vmem:[%s1234_s0 + $0x8] sm:$0xff]  ;;  %329 = vrot.lane.b32.xlu0 %v325_v0, %s1020_s11  ;;  %518 = vmatpush.msra.mxu2 %v498_v2  ;;  %v312_v7 = vld [vmem:[%s1234_s0] sm:$0xff]  ;;  %v838_v9 = vld [vmem:[%s1234_s0 + $0x10] sm:$0xff]  ;;  %286 = vst.msk [vmem:[#allocation2 + $0x8] sm:$0xff] %vm284_vm0, %v1021_v14  ;;  %vm309_vm2 = vcmask 556064  }
  0x1a   : > { %304 = vrot.lane.b32.xlu1 %v299_v1, %s1020_s11  ;;  %v313_v3 = vld [vmem:[%s1234_s0 + $0x8] sm:$0x7f]  ;;  %v840_v10 = vld [vmem:[%s1234_s0 + $0x11] sm:$0xff]  ;;  %v841_v12 = vld [vmem:[%s1234_s0 + $0x19] sm:$0x7f]  ;;  %285 = vst.msk [vmem:[#allocation2] sm:$0xff] %vm284_vm0, %v1021_v14 }
  0x1b   : > { %318 = vrot.lane.b32.xlu2 %v313_v3, %s1020_s11  ;;  %519 = vmatpush.msra.mxu2 %v497_v4  ;;  %v401_v5 = vld [vmem:[#allocation6 + $0x88] sm:$0xff]  ;;  %v496_v6 = vld [vmem:[#allocation6 + $0xc0] sm:$0xff]  ;;  %v837_v11 = vld [vmem:[%s1234_s0 + $0x18] sm:$0xff]  ;;  %287 = vst.msk [vmem:[#allocation2 + $0x10] sm:$0xff] %vm284_vm0, %v1021_v14 }
  0x1c   : > { %861 = vmatpush.msra.mxu3 %v401_v5  ;;  %422 = vmatpush.msra.mxu0 %v401_v5  ;;  %v326_v8 = vld [vmem:[%s1234_s0 + $0x9] sm:$0x7f]  ;;  %v839_v13 = vld [vmem:[%s1234_s0 + $0x18] sm:$0x7f]  ;;  %288 = vst.msk [vmem:[#allocation2 + $0x18] sm:$0xff] %vm284_vm0, %v1021_v14 }
  0x1d   : > { %520 = vmatpush.msra.mxu2 %v496_v6  ;;  %v400_v15 = vld [vmem:[#allocation6 + $0x80] sm:$0xff]  ;;  %v495_v16 = vld [vmem:[#allocation6 + $0xb8] sm:$0xff]  ;;  %v494_v19 = vld [vmem:[#allocation6 + $0xb0] sm:$0xff]  ;;  %289 = vst.msk [vmem:[#allocation2 + $0x20] sm:$0xff] %vm284_vm0, %v1021_v14 }
  0x1e   : > { %v399_v17 = vld [vmem:[#allocation6 + $0x78] sm:$0xff]  ;;  %862 = vmatpush.msra.mxu3 %v400_v15  ;;  %v387_v18 = vld [vmem:[#allocation6 + $0x40] sm:$0xff]  ;;  %423 = vmatpush.msra.mxu0 %v400_v15  ;;  %290 = vst.msk [vmem:[#allocation2 + $0x28] sm:$0xff] %vm284_vm0, %v1021_v14  ;;  %v398_v20 = vld [vmem:[#allocation6 + $0x70] sm:$0xff] }
  0x1f   : > { %521 = vmatpush.msra.mxu2 %v495_v16  ;;  %463 = vmatpush.msra.mxu1 %v387_v18  ;;  %291 = vst.msk [vmem:[#allocation2 + $0x30] sm:$0xff] %vm284_vm0, %v1021_v14  ;;  %v386_v21 = vld [vmem:[#allocation6 + $0x38] sm:$0xff]  ;;  %v493_v22 = vld [vmem:[#allocation6 + $0xa8] sm:$0xff]  ;;  %v385_v24 = vld [vmem:[#allocation6 + $0x30] sm:$0xff] }
  0x20   : > { %863 = vmatpush.msra.mxu3 %v399_v17  ;;  %424 = vmatpush.msra.mxu0 %v399_v17  ;;  %292 = vst.msk [vmem:[#allocation2 + $0x38] sm:$0xff] %vm284_vm0, %v1021_v14  ;;  %v397_v23 = vld [vmem:[#allocation6 + $0x68] sm:$0xff]  ;;  %v492_v25 = vld [vmem:[#allocation6 + $0xa0] sm:$0xff]  ;;  %v491_v28 = vld [vmem:[#allocation6 + $0x98] sm:$0xff] }
  0x21   : > { %316 = vrot.lane.b32.xlu0 %v312_v7, %s1020_s11  ;;  %522 = vmatpush.msra.mxu2 %v494_v19  ;;  %293 = vst.msk [vmem:[#allocation2 + $0x40] sm:$0xff] %vm284_vm0, %v1021_v14  ;;  %v396_v26 = vld [vmem:[#allocation6 + $0x60] sm:$0xff]  ;;  %v384_v27 = vld [vmem:[#allocation6 + $0x28] sm:$0xff]  ;;  %v395_v29 = vld [vmem:[#allocation6 + $0x58] sm:$0xff] }
  0x22   : > { %331 = vrot.lane.b32.xlu1 %v326_v8, %s1020_s11  ;;  %294 = vst.msk [vmem:[#allocation2 + $0x48] sm:$0xff] %vm284_vm0, %v1021_v14  ;;  %864 = vmatpush.msra.mxu3 %v398_v20  ;;  %v383_v30 = vld [vmem:[#allocation6 + $0x20] sm:$0xff]  ;;  %v490_v31 = vld [vmem:[#allocation6 + $0x90] sm:$0xff]  ;;  %v382_v33 = vld [vmem:[#allocation6 + $0x18] sm:$0xff] }
  0x23   : > { %343 = vrot.lane.b32.xlu2 %v838_v9, %s1020_s11  ;;  %295 = vst.msk [vmem:[#allocation2 + $0x50] sm:$0xff] %vm284_vm0, %v1021_v14  ;;  %464 = vmatpush.msra.mxu1 %v386_v21  ;;  %v394_v32 = vld [vmem:[#allocation6 + $0x50] sm:$0xff]  ;;  %v393_v34 = vld [vmem:[#allocation6 + $0x48] sm:$0xff]  ;;  %v379_v38 = vld [vmem:[#allocation6] sm:$0xff] }
  0x24   : > { %296 = vst.msk [vmem:[#allocation2 + $0x58] sm:$0xff] %vm284_vm0, %v1021_v14  ;;  %523 = vmatpush.msra.mxu2 %v493_v22  ;;  %425 = vmatpush.msra.mxu0 %v398_v20  ;;  %v381_v36 = vld [vmem:[#allocation6 + $0x10] sm:$0xff]  ;;  %v380_v37 = vld [vmem:[#allocation6 + $0x8] sm:$0xff] }
  0x25   : > { %297 = vst [vmem:[#allocation4] sm:$0x3] %v1021_v14  ;;  %865 = vmatpush.msra.mxu3 %v397_v23  ;;  %465 = vmatpush.msra.mxu1 %v385_v24 }
  0x26   : > { %524 = vmatpush.msra.mxu2 %v492_v25  ;;  %426 = vmatpush.msra.mxu0 %v397_v23 }
  0x27   : > { %866 = vmatpush.msra.mxu3 %v396_v26  ;;  %466 = vmatpush.msra.mxu1 %v384_v27 }
  0x28   : > { %525 = vmatpush.msra.mxu2 %v491_v28  ;;  %427 = vmatpush.msra.mxu0 %v396_v26 }
  0x29   : > { %367 = vrot.lane.b32.xlu0 %v840_v10, %s1020_s11  ;;  %867 = vmatpush.msra.mxu3 %v395_v29 }
  0x2a   : > { %355 = vrot.lane.b32.xlu1 %v838_v9, %s1020_s11  ;;  %467 = vmatpush.msra.mxu1 %v383_v30 }
  0x2b   : > { %345 = vrot.lane.b32.xlu2 %v837_v11, %s1020_s11  ;;  %526 = vmatpush.msra.mxu2 %v490_v31 }
  0x2c   : > { %428 = vmatpush.msra.mxu0 %v395_v29  ;;  %868 = vmatpush.msra.mxu3 %v394_v32 }
  0x2d   : > { %468 = vmatpush.msra.mxu1 %v382_v33 }
  0x2e   : > { %429 = vmatpush.msra.mxu0 %v394_v32  ;;  %869 = vmatpush.msra.mxu3 %v393_v34 }
  0x2f   : > { %469 = vmatpush.msra.mxu1 %v381_v36 }
  0x30   : > { %430 = vmatpush.msra.mxu0 %v393_v34 }
  0x31   : > { %302 = vrot.lane.b32.xlu0 %v312_v7, %s1020_s11  ;;  %470 = vmatpush.msra.mxu1 %v380_v37  ;;  %v549_v37 = vld [vmem:[#allocation4] sm:$0x1] }
  0x32   : > { %369 = vrot.lane.b32.xlu1 %v841_v12, %s1020_s11 }
  0x33   : > { %357 = vrot.lane.b32.xlu2 %v839_v13, %s1020_s11  ;;  %471 = vmatpush.msra.mxu1 %v379_v38 }
  0x75   : > { %v319_v35 = vpop.permute.xlu2 %318 }
  0x76   : > { %324 = vst.msk [vmem:[#allocation2 + $0x9] sm:$0x7f] %vm323_vm1, %v319_v35 }
  0x7d   : > { %v344_v39 = vpop.permute.xlu2 %343 }
  0x7e   : > { %349 = vst.msk [vmem:[#allocation2 + $0x30] sm:$0xff] %vm309_vm2, %v344_v39 }
  0x85   : > { %v346_v40 = vpop.permute.xlu2 %345  ;;  %v390_v48 = vld [vmem:[#allocation2 + $0x30] sm:$0xff] }
  0x86   : > { %350 = vst.msk [vmem:[#allocation2 + $0x38] sm:$0xff] %vm309_vm2, %v346_v40  ;;  %v561_v40 = vld [vmem:[#allocation4 + $0x1] sm:$0x1] }
  0x8b   : > { %v330_v41 = vpop.permute.xlu0 %329 }
  0x8c   : > { %v305_v42 = vpop.permute.xlu1 %304  ;;  %336 = vst.msk [vmem:[#allocation2 + $0x40] sm:$0xff] %vm309_vm2, %v330_v41 }
  0x8d   : > { %311 = vst.msk [vmem:[#allocation2 + $0x28] sm:$0xff] %vm309_vm2, %v305_v42  ;;  %v358_v43 = vpop.permute.xlu2 %357  ;;  %v391_v53 = vld [vmem:[#allocation2 + $0x38] sm:$0xff] }
  0x8e   : > { %362 = vst.msk [vmem:[#allocation2 + $0x19] sm:$0x7f] %vm323_vm1, %v358_v43 }
  0x93   : > { %v317_v44 = vpop.permute.xlu0 %316  ;;  %v485_v45 = vld [vmem:[#allocation2 + $0x40] sm:$0xff] }
  0x94   : > { %v332_v46 = vpop.permute.xlu1 %331  ;;  %322 = vst.msk [vmem:[#allocation2 + $0x1] sm:$0xff] %vm309_vm2, %v317_v44  ;;  %850 = vmatmul.msk.f32.vlgmr.msra.gmra.mxu2 %vm284_vm0, %v485_v45  ;;  %v389_v47 = vld [vmem:[#allocation2 + $0x28] sm:$0xff] }
  0x95   : > { %337 = vst.msk [vmem:[#allocation2 + $0x48] sm:$0x7f] %vm323_vm1, %v332_v46  ;;  %843 = vmatmul.msk.f32.vlgmr.msra.gmra.mxu3 %vm284_vm0, %v389_v47 }
  0x9b   : > { %v368_v49 = vpop.permute.xlu0 %367  ;;  %v375_v50 = vld [vmem:[#allocation2] sm:$0xff]  ;;  %v376_v55 = vld [vmem:[#allocation2 + $0x8] sm:$0xff] }
  0x9c   : > { %v356_v51 = vpop.permute.xlu1 %355  ;;  %373 = vst.msk [vmem:[#allocation2 + $0x50] sm:$0xff] %vm309_vm2, %v368_v49  ;;  %846 = vmatmul.msk.f32.vlgmr.msra.gmra.mxu1 %vm284_vm0, %v375_v50  ;;  %v486_v52 = vld [vmem:[#allocation2 + $0x48] sm:$0xff] }
  0x9d   : > { %361 = vst.msk [vmem:[#allocation2 + $0x11] sm:$0xff] %vm309_vm2, %v356_v51  ;;  %851 = vmatmul.msk.f32.gmra.mxu2 %vm284_vm0, %v486_v52  ;;  %844 = vmatmul.msk.f32.gmra.mxu3 %vm284_vm0, %v390_v48 }
  0xa3   : > { %v303_v54 = vpop.permute.xlu0 %302  ;;  %v487_v57 = vld [vmem:[#allocation2 + $0x50] sm:$0xff] }
  0xa4   : > { %v370_v56 = vpop.permute.xlu1 %369  ;;  %310 = vst.msk [vmem:[#allocation2 + $0x20] sm:$0xff] %vm309_vm2, %v303_v54  ;;  %847 = vmatmul.msk.f32.gmra.mxu1 %vm284_vm0, %v376_v55  ;;  %v377_v59 = vld [vmem:[#allocation2 + $0x10] sm:$0xff]  ;;  %v378_v61 = vld [vmem:[#allocation2 + $0x18] sm:$0xff] }
  0xa5   : > { %374 = vst.msk [vmem:[#allocation2 + $0x58] sm:$0x7f] %vm323_vm1, %v370_v56  ;;  %852 = vmatmul.msk.f32.gmra.mxu2 %vm284_vm0, %v487_v57  ;;  %845 = vmatmul.msk.f32.gmra.mxu3 %vm284_vm0, %v391_v53 }
  0xab   : > { %v388_v58 = vld [vmem:[#allocation2 + $0x20] sm:$0xff] }
  0xac   : > { %842 = vmatmul.msk.f32.vlgmr.msra.gmra.mxu0 %vm284_vm0, %v388_v58  ;;  %848 = vmatmul.msk.f32.gmra.mxu1 %vm284_vm0, %v377_v59  ;;  %v488_v60 = vld [vmem:[#allocation2 + $0x58] sm:$0xff] }
  0xad   : > { %853 = vmatmul.msk.f32.gmra.mxu2 %vm284_vm0, %v488_v60 }
  0xb4   : > { %849 = vmatmul.msk.f32.gmra.mxu1 %vm284_vm0, %v378_v61 }
 0x117   : > { %v528_v62 = vpop.f32.mrf.mxu2 }
 0x118   : > { %v435_v0 = vpop.f32.mrf.mxu3 }
 0x119   : > { %v473_v63 = vpop.f32.mrf.mxu1 }
 0x120   : > { %v531_v1 = vpop.f32.mrf.mxu2  ;;  %v438_v5 = vpop.f32.mrf.mxu3 }
 0x121   : > { %v476_v2 = vpop.f32.mrf.mxu1 }
 0x122   : > { %v477_v3 = vadd.f32 %v476_v2, %v435_v0 }
 0x124   : > { %v541_v4 = vadd.f32 %v531_v1, %v477_v3 }
 0x126   : > { %546 = vst [vmem:[#allocation3] sm:$0xff] %v541_v4  ;;  %v563_v14 = vmul.f32 %v541_v4, %v541_v4 }
 0x128   : > { %v534_v6 = vpop.f32.mrf.mxu2  ;;  %v441_v16 = vpop.f32.mrf.mxu3 }
 0x129   : > { %v432_v7 = vpop.f32.mrf.mxu0  ;;  %v479_v8 = vpop.f32.mrf.mxu1 }
 0x12a   : > { %v474_v9 = vadd.f32 %v473_v63, %v432_v7  ;;  %v480_v10 = vadd.f32 %v479_v8, %v438_v5 }
 0x12c   : > { %v540_v11 = vadd.f32 %v528_v62, %v474_v9  ;;  %v542_v12 = vadd.f32 %v534_v6, %v480_v10 }
 0x12e   : > { %545 = vst [vmem:[#allocation3 + $0x10] sm:$0xff] %v540_v11  ;;  %v562_v13 = vmul.f32 %v540_v11, %v540_v11  ;;  %v550_v15 = vadd.f32 %v541_v4, %v540_v11  ;;  %v564_v22 = vmul.f32 %v542_v12, %v542_v12 }
 0x12f   : > { %547 = vst [vmem:[#allocation3 + $0x18] sm:$0xff] %v542_v12 }
 0x130   : > { %v537_v18 = vpop.f32.mrf.mxu2  ;;  %v566_v19 = vadd.f32 %v563_v14, %v562_v13  ;;  %v551_v21 = vadd.f32 %v550_v15, %v542_v12 }
 0x131   : > { %v482_v17 = vpop.f32.mrf.mxu1 }
 0x132   : > { %v483_v20 = vadd.f32 %v482_v17, %v441_v16  ;;  %v567_v24 = vadd.f32 %v566_v19, %v564_v22 }
 0x134   : > { %v543_v23 = vadd.f32 %v537_v18, %v483_v20 }
 0x136   : > { %548 = vst [vmem:[#allocation3 + $0x8] sm:$0xff] %v543_v23  ;;  %v552_v25 = vadd.f32 %v551_v21, %v543_v23  ;;  %v565_v26 = vmul.f32 %v543_v23, %v543_v23 }
 0x138   : > { %v553_v27 = vrot.slane %v552_v25, 4  ;;  %v568_v28 = vadd.f32 %v567_v24, %v565_v26 }
 0x13a   : > { %v554_v29 = vadd.f32 %v553_v27, %v552_v25  ;;  %v569_v30 = vrot.slane %v568_v28, 4 }
 0x13c   : > { %v555_v31 = vrot.slane %v554_v29, 2  ;;  %v570_v32 = vadd.f32 %v569_v30, %v568_v28 }
 0x13e   : > { %v556_v33 = vadd.f32 %v555_v31, %v554_v29  ;;  %v571_v34 = vrot.slane %v570_v32, 2 }
 0x140   : > { %v557_v35 = vrot.slane %v556_v33, 1  ;;  %v572_v36 = vadd.f32 %v571_v34, %v570_v32 }
 0x142   : > { %v558_v38 = vadd.f32 %v557_v35, %v556_v33  ;;  %v573_v39 = vrot.slane %v572_v36, 1 }
 0x144   : > { %v559_v41 = vadd.f32 %v558_v38, %v549_v37  ;;  %v574_v42 = vadd.f32 %v573_v39, %v572_v36 }
 0x146   : > { %560 = vst [vmem:[#allocation4] sm:$0x1] %v559_v41  ;;  %v575_v43 = vadd.f32 %v574_v42, %v561_v40 }
 0x148   : > { %576 = vst [vmem:[#allocation4 + $0x1] sm:$0x1] %v575_v43 }
 0x149 PF: > { %p854_p8 = scmp.ne.s32.totalorder %s1007_s18, 1 }
 0x14b   : > { %580 = sbr.rel (%p854_p8) target bundleno = 680 (0x2a8), region = 56 }
 0x150   : > { %v601_v44 = vld [vmem:[%s1236_s2 + $0x78] sm:$0xff]  ;;  %v600_v45 = vld [vmem:[%s1236_s2 + $0x70] sm:$0xff]  ;;  %v599_v46 = vld [vmem:[%s1236_s2 + $0x68] sm:$0xff]  ;;  %vm649_vm6 = vcmask 64512  }
 0x151   : > { %602 = vmatpush.msra.mxu0 %v601_v44  ;;  %v598_v47 = vld [vmem:[%s1236_s2 + $0x60] sm:$0xff]  ;;  %v597_v48 = vld [vmem:[%s1236_s2 + $0x58] sm:$0xff]  ;;  %v596_v49 = vld [vmem:[%s1236_s2 + $0x50] sm:$0xff] }
 0x152   : > { %v595_v50 = vld [vmem:[%s1236_s2 + $0x48] sm:$0xff]  ;;  %v594_v51 = vld [vmem:[%s1236_s2 + $0x40] sm:$0xff]  ;;  %v593_v52 = vld [vmem:[%s1236_s2 + $0x38] sm:$0xff] }
 0x153   : > { %603 = vmatpush.msra.mxu0 %v600_v45  ;;  %v592_v53 = vld [vmem:[%s1236_s2 + $0x30] sm:$0xff]  ;;  %v591_v54 = vld [vmem:[%s1236_s2 + $0x28] sm:$0xff]  ;;  %v590_v55 = vld [vmem:[%s1236_s2 + $0x20] sm:$0xff] }
 0x154   : > { %v589_v56 = vld [vmem:[%s1236_s2 + $0x18] sm:$0xff]  ;;  %v588_v57 = vld [vmem:[%s1236_s2 + $0x10] sm:$0xff]  ;;  %v587_v58 = vld [vmem:[%s1236_s2 + $0x8] sm:$0xff] }
 0x155   : > { %604 = vmatpush.msra.mxu0 %v599_v46  ;;  %v586_v59 = vld [vmem:[%s1236_s2] sm:$0xff]  ;;  %v700_v20 = vld [vmem:[#allocation3 + $0x10] sm:$0xff]  ;;  %v702_v23 = vld [vmem:[#allocation3 + $0x18] sm:$0xff] }
 0x156   : > { %v585_v60 = vld [vmem:[#allocation4] sm:$0x3]  ;;  %v703_v24 = vld [vmem:[#allocation3 + $0x8] sm:$0xff] }
 0x157   : > { %605 = vmatpush.msra.mxu0 %v598_v47  ;;  %v648_v61 = vld [vmem:[%s1237_s3] sm:$0xff] }
 0x158   : > { %668 = vmatpush.msra.mxu1 %v648_v61  ;;  %693 = vmatpush.msra.mxu2 %v648_v61  ;;  %v629_v11 = vld [vmem:[%s1238_s4] sm:$0x1]  ;;  %v645_v15 = vld [vmem:[%s1238_s4 + $0x1] sm:$0x1] }
 0x159   : > { %606 = vmatpush.msra.mxu0 %v597_v48  ;;  %v701_v22 = vld [vmem:[#allocation3] sm:$0xff] }
 0x15b   : > { %607 = vmatpush.msra.mxu0 %v596_v49 }
 0x15d   : > { %608 = vmatpush.msra.mxu0 %v595_v50 }
 0x15f   : > { %609 = vmatpush.msra.mxu0 %v594_v51 }
 0x161   : > { %610 = vmatpush.msra.mxu0 %v593_v52 }
 0x163   : > { %611 = vmatpush.msra.mxu0 %v592_v53 }
 0x165   : > { %612 = vmatpush.msra.mxu0 %v591_v54 }
 0x167   : > { %613 = vmatpush.msra.mxu0 %v590_v55 }
 0x169   : > { %614 = vmatpush.msra.mxu0 %v589_v56 }
 0x16b   : > { %615 = vmatpush.msra.mxu0 %v588_v57 }
 0x16d   : > { %616 = vmatpush.msra.mxu0 %v587_v58 }
 0x16f   : > { %617 = vmatpush.msra.mxu0 %v586_v59 }
 0x170   : > { %618 = vmatmul.f32.vlgmr.msra.gmra.mxu0 %v585_v60 }
 0x1ed   : > { %v619_v62 = vpop.f32.mrf.mxu0 }
 0x1ee   : > { %v622_v63 = vmul.f32 0.001953125, %v619_v62 }
 0x1f0   : > { %v623_v0 = vmul.f32 %v622_v63, %v622_v63 }
 0x1f2   : > { %v625_v1 = vrot.slane %v623_v0, 7 }
 0x1f4   : > { %v627_v2 = vsub.f32 %v622_v63, %v625_v1 }
 0x1f6   : > { %v628_v3 = vmax.f32 %v627_v2, 0.0 }
 0x1f8   : > { %v630_v4 = vadd.f32 1e-05, %v628_v3 }
 0x1fa   : > { %925 = vrsqrt.f32 %v630_v4  ;;  %vm637_vm4 = vweird.f32 %v630_v4 }
 0x200   : > { %v926_v5 = vpop.eup %925 }
 0x201   : > { %v632_v6 = vmul.f32 %v926_v5, %v630_v4  ;;  %vm638_vm3 = vweird.f32 %v926_v5 }
 0x202   : > { %vm639_vm5 = vmor %vm637_vm4, %vm638_vm3 }
 0x203   : > { %v633_v7 = vmul.f32 %v926_v5, %v632_v6 }
 0x205   : > { %v634_v8 = vmul.f32 0.5, %v633_v7 }
 0x207   : > { %v635_v9 = vsub.f32 1.5, %v634_v8 }
 0x209   : > { %v636_v10 = vmul.f32 %v926_v5, %v635_v9 }
 0x20b   : > { %v640_v12 = vsel %vm639_vm5, %v926_v5, %v636_v10 }
 0x20c   : > { %v642_v13 = vrot.slane %v640_v12, 1 }
 0x20e   : > { %v644_v14 = vmul.f32 %v642_v13, %v629_v11 }
 0x210   : > { %855 = vmatmul.msk.f32.vlgmr.msra.gmra.mxu1 %vm649_vm6, %v644_v14  ;;  %v646_v16 = vmul.f32 %v644_v14, %v622_v63 }
 0x212   : > { %v647_v17 = vsub.f32 %v645_v15, %v646_v16 }
 0x214   : > { %856 = vmatmul.msk.f32.vlgmr.msra.gmra.mxu2 %vm649_vm6, %v647_v17 }
 0x28d   : > { %v670_v18 = vpop.f32.mrf.mxu1 }
 0x28e   : > { %673 = vst [vmem:[#allocation5] sm:$0x1] %v670_v18 }
 0x295   : > { %v923_v21 = vld [vmem:[#allocation5] ss:$0 sm:$0xff] }
 0x296   : > { %v706_v25 = vmul.f32 %v923_v21, %v700_v20  ;;  %v707_v26 = vmul.f32 %v923_v21, %v701_v22  ;;  %v708_v27 = vmul.f32 %v923_v21, %v702_v23  ;;  %v709_v28 = vmul.f32 %v923_v21, %v703_v24 }
 0x297   : > { %v695_v19 = vpop.f32.mrf.mxu2 }
 0x298   : > { %698 = vst [vmem:[#allocation5 + $0x1] sm:$0x1] %v695_v19 }
 0x29f   : > { %v924_v29 = vld [vmem:[#allocation5 + $0x1] ss:$0 sm:$0xff] }
 0x2a0   : > { %v712_v30 = vadd.f32 %v924_v29, %v706_v25  ;;  %v713_v31 = vadd.f32 %v924_v29, %v707_v26  ;;  %v714_v32 = vadd.f32 %v924_v29, %v708_v27  ;;  %v715_v33 = vadd.f32 %v924_v29, %v709_v28 }
 0x2a2   : > { %v716_v34 = vmax.f32 %v712_v30, 0.0  ;;  %v717_v35 = vmax.f32 %v713_v31, 0.0  ;;  %v718_v36 = vmax.f32 %v714_v32, 0.0  ;;  %v719_v37 = vmax.f32 %v715_v33, 0.0 }
 0x2a4   : > { %720 = vst [vmem:[#allocation9] sm:$0xff] %v716_v34 }
 0x2a5   : > { %721 = vst [vmem:[#allocation9 + $0x8] sm:$0xff] %v717_v35 }
 0x2a6   : > { %722 = vst [vmem:[#allocation9 + $0x10] sm:$0xff] %v718_v36 }
 0x2a7   : > { %723 = vst [vmem:[#allocation9 + $0x18] sm:$0xff] %v719_v37 }
 0x2a8 PF: > { %p888_p9 = scmp.eq.s32.totalorder %s827_s21, 1  ;;  %s740_s9 = sshll.u32 %s1239_s5, 4  ;;  %s741_s9 = int_to_ptr.hbm [resolvable:$true] %s740_s9 }
 0x2a9   : > { %s1022_s10 = smov [#allocation9]   ;;  %s1023_s12 = smov 128  }
 0x2aa   : > { %s738_s11 = sshll.u32 %s1022_s10, 4  ;;  %s1024_s13 = smov 8   ;;  %s739_s11 = int_to_ptr.vmem [resolvable:$true] %s738_s11 }
 0x2ab   : > { %875 = dma.vmem_to_hbm [thread:$0]  (%p888_p9), %s739_s11, 512, %s741_s9, [#allocation8], %s1023_s12, %s1023_s12, %s1024_s13  }
 0x2ac PF: > { %p889_p10 = scmp.ge.s32.totalorder %s1015_s20, 2  ;;  %p890_p11 = scmp.eq.s32.totalorder %s828_s22, 1 }
 0x2ae   : > { %p883_p12 = pnand %p890_p11, %p889_p10 }
 0x2b0   : > { %p884_p13 = pneg %p883_p12 }
 0x2b2   : > { %1002 = dma.done.wait (%p884_p13), [#allocation8], 512  }
 0x2b3   : > { %1004 = vsyncadd (%p884_p13), [#allocation8], 4294966784  ;;  %s19_s20 = sadd.s32 1, %s1015_s20   ;;  %s1241_s18 = smov %s1011_s19 }
 0x2b4   : > { %p16_p0 = scmp.ge.s32.totalorder %s19_s20, 4   ;;  %s1242_s19 = smov %s1244_s23 }
 0x2b6   :  { %18 = sbr.rel (!%p16_p0) target bundleno = 4 (0x4), region = 103 }
 0x2bb   :  { %762 = vsyncpa [#allocation7], 1 }
 0x2bc   :  { %764 = vsyncpa [#allocation7 + $0x1], 1 }
 0x2bd   :  { %765 = vsyncpa [#allocation8], 1 }
 0x2be   :  { %767 = vsyncpa [#allocation8 + $0x1], 1 }

</bundles_post_ra>
